<compile_context>
chip_gen: v5e
topology: v5e:2x2
jax: 0.10.0
libtpu: 0.0.40
codegen_flags: <defaults>
</compile_context>

<pallas_src>
import jax
import jax.numpy as jnp
from jax import lax
from jax.experimental import pallas as pl
from jax.experimental.pallas import tpu as pltpu

# Module hyper-parameters (deterministic, from focal_loss.__init__ defaults)
ALPHA = 0.25
GAMMA = 2          # integer power -> exact multiply, matches torch (1 - p_t) ** 2
EPS = 1e-7
LAMBDA_1 = 1.0
LAMBDA_2 = 4.0


def _make_stats_kernel(C, bb, tr, R, needs_mask, inter_sub):
    """Build the fused focal-map + dice-intersection-partial kernel.

    Ref shapes seen by the kernel:
      preds_ref : (bb, C, tr, 128)  logits, native dtype (cast to f32 in-kernel)
      tgt_ref   : (bb, tr, 128)     integer labels
      focal_ref : (bb, tr, 128)     f32 output = LAMBDA_2 * per-pixel focal loss
      inter_ref : (inter_sub, 128)  f32 per-(batch-block, tile) dice partial
    """
    neg_alpha_l2 = -ALPHA * LAMBDA_2

    def kernel(preds_ref, tgt_ref, focal_ref, inter_ref):
        logits = preds_ref[...].astype(jnp.float32)     # (bb, C, tr, 128)
        tgt = tgt_ref[...]                              # (bb, tr, 128)

        # max over the class axis (leading dim -> plain cross-vreg VPU maxes)
        m = logits[:, 0]
        for c in range(1, C):
            m = jnp.maximum(m, logits[:, c])

        # denom = sum_c exp(x_c - m); numer = exp(x_target - m)  (no softmax map)
        denom = jnp.zeros_like(m)
        numer = jnp.zeros_like(m)
        for c in range(C):
            e_c = jnp.exp(logits[:, c] - m)
            denom = denom + e_c
            numer = numer + jnp.where(tgt == c, e_c, 0.0)

        # Exact divide on purpose: HBM-bound on v5e/v6e so it's free, and it
        # keeps the 1e-5 tolerance (approx reciprocal only pays on v7x).
        p_t = numer / denom                              # (bb, tr, 128)
        log_pt = jnp.log(p_t + EPS)
        omp = 1.0 - p_t
        # pre-scaled by LAMBDA_2 so the wrapper only adds the dice-log scalar
        focal_ref[...] = (neg_alpha_l2 * omp * omp * log_pt).astype(focal_ref.dtype)

        if needs_mask:
            # cdiv grid: zero out rows past R before the dice partial sum
            t = pl.program_id(1)
            row_ids = lax.broadcasted_iota(jnp.int32, (tr, 128), 0) + t * tr
            p_src = jnp.where(row_ids < R, p_t, 0.0)
        else:
            p_src = p_t

        if inter_sub == 8:
            # Sublane-preserving partial: layout-compatible reshape, then only
            # cross-vreg VALU adds (no XLU cross-sublane reduce per tile).
            grouped = p_src.reshape(bb, tr // 8, 8, 128)
            inter_ref[...] = grouped.sum(axis=0).sum(axis=0)          # (8, 128)
        else:
            # tiny full-extent tile (tr not a multiple of 8): cheap fallback
            inter_ref[...] = jnp.sum(jnp.sum(p_src, axis=0), axis=0,
                                     keepdims=True)                   # (1, 128)

    return kernel


def focal_dice_loss(preds_nchw, targets, *, tile_rows=2048,
                    vmem_budget_bytes=28 * 1024 * 1024):
    B, C, H, W = preds_nchw.shape
    HW = H * W
    assert HW % 128 == 0, "H*W must be a multiple of 128 (lane width)"
    R = HW // 128

    logit_bytes = jnp.dtype(preds_nchw.dtype).itemsize
    tgt_bytes = jnp.dtype(targets.dtype).itemsize
    out_bytes = 4                                        # focal map stays f32
    # bytes per (row of 128 pixels, single batch) moved per step
    row_bytes = 128 * (C * logit_bytes + tgt_bytes + out_bytes)
    db_row_bytes = 2 * row_bytes                         # double-buffered

    # --- VMEM-budget-aware row tile (target 2048 rows) -----------------------
    budget_rows = max(32, (vmem_budget_bytes // db_row_bytes) // 32 * 32)
    target_tr = min(tile_rows, budget_rows)

    if R <= target_tr:
        tr = R                      # full-extent block: always layout-legal
        n_tiles = 1
        needs_mask = False
    else:
        tr = max(32, (target_tr // 32) * 32)   # mult of 32: legal for f32/bf16/i8
        n_tiles = pl.cdiv(R, tr)               # no exact-divisor requirement
        needs_mask = (R % tr) != 0

    # --- Batch blocking for small images (keep per-step payload >= ~2 MiB) ---
    rows_per_step = min(tr, R)
    step_bytes = rows_per_step * row_bytes
    want_bb = max(1, (2 * 1024 * 1024 + step_bytes - 1) // step_bytes)
    max_bb_budget = max(1, vmem_budget_bytes // (2 * step_bytes))
    want_bb = min(want_bb, max_bb_budget, B)
    bb = 1
    for d in range(1, B + 1):                  # largest divisor of B <= want_bb
        if B % d == 0 and d <= want_bb:
            bb = d
    n_bblk = B // bb

    inter_sub = 8 if tr % 8 == 0 else 1

    # Free, contiguous reshapes; NO dtype casts in the wrapper (kernel casts).
    preds_r = preds_nchw.reshape(B, C, R, 128)
    tgt_r = targets.reshape(B, R, 128)

    n_pix = B * HW
    cost = pl.CostEstimate(
        flops=int((6 * C + 10) * n_pix),
        transcendentals=int((C + 1) * n_pix),            # C exps + 1 log per pixel
        bytes_accessed=int(n_pix * (C * logit_bytes + tgt_bytes + out_bytes)
                           + n_bblk * n_tiles * inter_sub * 128 * 4),
    )

    # Explicit scoped-VMEM limit (double-buffered working set + headroom).
    buf_bytes = bb * tr * row_bytes + inter_sub * 128 * 4
    vmem_limit = int(min(40 << 20, max(2 * buf_bytes + (2 << 20), 16 << 20)))

    kernel = _make_stats_kernel(C, bb, tr, R, needs_mask, inter_sub)

    focal_scaled, inter_part = pl.pallas_call(
        kernel,
        out_shape=(
            jax.ShapeDtypeStruct((B, R, 128), jnp.float32),              # L2*focal
            jax.ShapeDtypeStruct((n_bblk, n_tiles, inter_sub, 128),      # partials
                                 jnp.float32),
        ),
        grid=(n_bblk, n_tiles),
        in_specs=[
            pl.BlockSpec((bb, C, tr, 128), lambda b, t: (b, 0, t, 0)),
            pl.BlockSpec((bb, tr, 128), lambda b, t: (b, t, 0)),
        ],
        out_specs=(
            pl.BlockSpec((bb, tr, 128), lambda b, t: (b, t, 0)),
            pl.BlockSpec((None, None, inter_sub, 128), lambda b, t: (b, t, 0, 0)),
        ),
        compiler_params=pltpu.CompilerParams(
            # Per-(b, t) partials -> no cross-step accumulation -> both axes
            # parallel (keeps both v7x TensorCores busy even when B == 1).
            dimension_semantics=("parallel", "parallel"),
            vmem_limit_bytes=vmem_limit,
        ),
        cost_estimate=cost,
    )(preds_r, tgt_r)

    # Finalize the scalar dice-log in the wrapper (tiny reduce over partials).
    # Analytically sum(softmax) == sum(one_hot) == n_pix -> dice denom = 2*N + eps
    # (matches the reference's explicit psum/tsum up to fp rounding for finite inputs).
    inter = jnp.sum(inter_part, dtype=jnp.float32)
    dice = (2.0 * inter + EPS) / (2.0 * float(n_pix) + EPS)
    dice_log = -jnp.log(dice)

    # Broadcast-add of one scalar; XLA fuses this with the (free) reshape back.
    out = LAMBDA_1 * dice_log + focal_scaled
    return out.reshape(B, H, W)


def _reference(preds, targets):
    """Pure-JAX mirror of the PyTorch forward for correctness checking."""
    p = jax.nn.softmax(preds.astype(jnp.float32), axis=1)
    oh = jax.nn.one_hot(targets, preds.shape[1], dtype=jnp.float32)   # (B,H,W,C)
    oh = jnp.transpose(oh, (0, 3, 1, 2))                              # (B,C,H,W)
    p_t = jnp.sum(p * oh, axis=1)
    focal = -ALPHA * (1.0 - p_t) ** GAMMA * jnp.log(p_t + EPS)
    inter = jnp.sum(p * oh)
    psum = jnp.sum(p)
    tsum = jnp.sum(oh)
    dice_log = -jnp.log((2.0 * inter + EPS) / (psum + tsum + EPS))
    return LAMBDA_1 * dice_log + LAMBDA_2 * focal


if __name__ == "__main__":
    key = jax.random.PRNGKey(0)
    kp, kt = jax.random.split(key)
    B, C, H, W = 2, 4, 16, 16

    preds = jax.random.normal(kp, (B, C, H, W), dtype=jnp.float32)
    targets = jax.random.randint(kt, (B, H, W), 0, C, dtype=jnp.int32)

    out = jax.block_until_ready(focal_dice_loss(preds, targets))
    ref = _reference(preds, targets)

    assert out.shape == (B, H, W)
    assert jnp.allclose(out, ref, atol=1e-5, rtol=1e-5), "mismatch vs pure-JAX reference"

    print("KERNEL_OK")
</pallas_src>

<mosaic_0001>
module attributes {stable_mosaic.version = 11 : i64} {
  func.func @kernel(%arg0: i32, %arg1: i32, %arg2: memref<2x4x2x128xf32, #tpu.memory_space<vmem>>, %arg3: memref<2x2x128xi32, #tpu.memory_space<vmem>>, %arg4: memref<2x2x128xf32, #tpu.memory_space<vmem>>, %arg5: memref<1x1x1x128xf32, #tpu.memory_space<vmem>>) attributes {dimension_semantics = [#tpu.dimension_semantics<parallel>, #tpu.dimension_semantics<parallel>], iteration_bounds = array<i64: 1, 1>, scalar_prefetch = 0 : i64, scratch_operands = 0 : i64, tpu.core_type = #tpu.core_type<tc>, window_params = [{transform_indices = @transform_0, window_bounds = array<i64: 2, 4, 2, 128>}, {transform_indices = @transform_1, window_bounds = array<i64: 2, 2, 128>}, {transform_indices = @transform_2, window_bounds = array<i64: 2, 2, 128>}, {transform_indices = @transform_3, window_bounds = array<i64: 1, 1, 1, 128>}]} {
    %c0 = arith.constant 0 : index
    %c0_0 = arith.constant 0 : index
    %c0_1 = arith.constant 0 : index
    %c0_2 = arith.constant 0 : index
    %0 = vector.load %arg2[%c0, %c0_0, %c0_1, %c0_2] : memref<2x4x2x128xf32, #tpu.memory_space<vmem>>, vector<2x4x2x128xf32>
    %c0_3 = arith.constant 0 : index
    %c0_4 = arith.constant 0 : index
    %c0_5 = arith.constant 0 : index
    %1 = vector.load %arg3[%c0_3, %c0_4, %c0_5] : memref<2x2x128xi32, #tpu.memory_space<vmem>>, vector<2x2x128xi32>
    %2 = vector.extract_strided_slice %0 {offsets = [0, 0, 0, 0], sizes = [2, 1, 2, 128], strides = [1, 1, 1, 1]} : vector<2x4x2x128xf32> to vector<2x1x2x128xf32>
    %3 = vector.shape_cast %2 : vector<2x1x2x128xf32> to vector<2x2x128xf32>
    %4 = vector.extract_strided_slice %0 {offsets = [0, 1, 0, 0], sizes = [2, 1, 2, 128], strides = [1, 1, 1, 1]} : vector<2x4x2x128xf32> to vector<2x1x2x128xf32>
    %5 = vector.shape_cast %4 : vector<2x1x2x128xf32> to vector<2x2x128xf32>
    %6 = arith.maximumf %3, %5 : vector<2x2x128xf32>
    %7 = vector.extract_strided_slice %0 {offsets = [0, 2, 0, 0], sizes = [2, 1, 2, 128], strides = [1, 1, 1, 1]} : vector<2x4x2x128xf32> to vector<2x1x2x128xf32>
    %8 = vector.shape_cast %7 : vector<2x1x2x128xf32> to vector<2x2x128xf32>
    %9 = arith.maximumf %6, %8 : vector<2x2x128xf32>
    %10 = vector.extract_strided_slice %0 {offsets = [0, 3, 0, 0], sizes = [2, 1, 2, 128], strides = [1, 1, 1, 1]} : vector<2x4x2x128xf32> to vector<2x1x2x128xf32>
    %11 = vector.shape_cast %10 : vector<2x1x2x128xf32> to vector<2x2x128xf32>
    %12 = arith.maximumf %9, %11 : vector<2x2x128xf32>
    %cst = arith.constant 0.000000e+00 : f32
    %13 = vector.broadcast %cst : f32 to vector<2x2x128xf32>
    %cst_6 = arith.constant 0.000000e+00 : f32
    %14 = vector.broadcast %cst_6 : f32 to vector<2x2x128xf32>
    %15 = vector.extract_strided_slice %0 {offsets = [0, 0, 0, 0], sizes = [2, 1, 2, 128], strides = [1, 1, 1, 1]} : vector<2x4x2x128xf32> to vector<2x1x2x128xf32>
    %16 = vector.shape_cast %15 : vector<2x1x2x128xf32> to vector<2x2x128xf32>
    %17 = arith.subf %16, %12 : vector<2x2x128xf32>
    %18 = math.exp %17 : vector<2x2x128xf32>
    %19 = arith.addf %13, %18 : vector<2x2x128xf32>
    %c0_i32 = arith.constant 0 : i32
    %20 = vector.broadcast %c0_i32 : i32 to vector<2x2x128xi32>
    %21 = arith.cmpi eq, %1, %20 : vector<2x2x128xi32>
    %cst_7 = arith.constant 0.000000e+00 : f32
    %22 = vector.broadcast %cst_7 : f32 to vector<2x2x128xf32>
    %23 = arith.select %21, %18, %22 : vector<2x2x128xi1>, vector<2x2x128xf32>
    %24 = arith.addf %14, %23 : vector<2x2x128xf32>
    %25 = vector.extract_strided_slice %0 {offsets = [0, 1, 0, 0], sizes = [2, 1, 2, 128], strides = [1, 1, 1, 1]} : vector<2x4x2x128xf32> to vector<2x1x2x128xf32>
    %26 = vector.shape_cast %25 : vector<2x1x2x128xf32> to vector<2x2x128xf32>
    %27 = arith.subf %26, %12 : vector<2x2x128xf32>
    %28 = math.exp %27 : vector<2x2x128xf32>
    %29 = arith.addf %19, %28 : vector<2x2x128xf32>
    %c1_i32 = arith.constant 1 : i32
    %30 = vector.broadcast %c1_i32 : i32 to vector<2x2x128xi32>
    %31 = arith.cmpi eq, %1, %30 : vector<2x2x128xi32>
    %cst_8 = arith.constant 0.000000e+00 : f32
    %32 = vector.broadcast %cst_8 : f32 to vector<2x2x128xf32>
    %33 = arith.select %31, %28, %32 : vector<2x2x128xi1>, vector<2x2x128xf32>
    %34 = arith.addf %24, %33 : vector<2x2x128xf32>
    %35 = vector.extract_strided_slice %0 {offsets = [0, 2, 0, 0], sizes = [2, 1, 2, 128], strides = [1, 1, 1, 1]} : vector<2x4x2x128xf32> to vector<2x1x2x128xf32>
    %36 = vector.shape_cast %35 : vector<2x1x2x128xf32> to vector<2x2x128xf32>
    %37 = arith.subf %36, %12 : vector<2x2x128xf32>
    %38 = math.exp %37 : vector<2x2x128xf32>
    %39 = arith.addf %29, %38 : vector<2x2x128xf32>
    %c2_i32 = arith.constant 2 : i32
    %40 = vector.broadcast %c2_i32 : i32 to vector<2x2x128xi32>
    %41 = arith.cmpi eq, %1, %40 : vector<2x2x128xi32>
    %cst_9 = arith.constant 0.000000e+00 : f32
    %42 = vector.broadcast %cst_9 : f32 to vector<2x2x128xf32>
    %43 = arith.select %41, %38, %42 : vector<2x2x128xi1>, vector<2x2x128xf32>
    %44 = arith.addf %34, %43 : vector<2x2x128xf32>
    %45 = vector.extract_strided_slice %0 {offsets = [0, 3, 0, 0], sizes = [2, 1, 2, 128], strides = [1, 1, 1, 1]} : vector<2x4x2x128xf32> to vector<2x1x2x128xf32>
    %46 = vector.shape_cast %45 : vector<2x1x2x128xf32> to vector<2x2x128xf32>
    %47 = arith.subf %46, %12 : vector<2x2x128xf32>
    %48 = math.exp %47 : vector<2x2x128xf32>
    %49 = arith.addf %39, %48 : vector<2x2x128xf32>
    %c3_i32 = arith.constant 3 : i32
    %50 = vector.broadcast %c3_i32 : i32 to vector<2x2x128xi32>
    %51 = arith.cmpi eq, %1, %50 : vector<2x2x128xi32>
    %cst_10 = arith.constant 0.000000e+00 : f32
    %52 = vector.broadcast %cst_10 : f32 to vector<2x2x128xf32>
    %53 = arith.select %51, %48, %52 : vector<2x2x128xi1>, vector<2x2x128xf32>
    %54 = arith.addf %44, %53 : vector<2x2x128xf32>
    %55 = arith.divf %54, %49 : vector<2x2x128xf32>
    %cst_11 = arith.constant 1.000000e-07 : f32
    %56 = vector.broadcast %cst_11 : f32 to vector<2x2x128xf32>
    %57 = arith.addf %55, %56 : vector<2x2x128xf32>
    %58 = math.log %57 : vector<2x2x128xf32>
    %cst_12 = arith.constant 1.000000e+00 : f32
    %59 = vector.broadcast %cst_12 : f32 to vector<2x2x128xf32>
    %60 = arith.subf %59, %55 : vector<2x2x128xf32>
    %cst_13 = arith.constant -1.000000e+00 : f32
    %61 = vector.broadcast %cst_13 : f32 to vector<2x2x128xf32>
    %62 = arith.mulf %61, %60 : vector<2x2x128xf32>
    %63 = arith.mulf %62, %60 : vector<2x2x128xf32>
    %64 = arith.mulf %63, %58 : vector<2x2x128xf32>
    %c0_14 = arith.constant 0 : index
    %c0_15 = arith.constant 0 : index
    %c0_16 = arith.constant 0 : index
    %65 = vector.load %arg4[%c0_14, %c0_15, %c0_16] : memref<2x2x128xf32, #tpu.memory_space<vmem>>, vector<2x2x128xf32>
    tpu.vector_store %arg4[%c0_14, %c0_15, %c0_16], %64 {strides = array<i32>} : memref<2x2x128xf32, #tpu.memory_space<vmem>>, vector<2x2x128xf32>,
    %cst_17 = arith.constant dense<0.000000e+00> : vector<2x128xf32>
    %66 = vector.multi_reduction <add>, %55, %cst_17 [0] : vector<2x2x128xf32> to vector<2x128xf32>
    %cst_18 = arith.constant dense<0.000000e+00> : vector<128xf32>
    %67 = vector.multi_reduction <add>, %66, %cst_18 [0] : vector<2x128xf32> to vector<128xf32>
    %68 = vector.shape_cast %67 : vector<128xf32> to vector<1x128xf32>
    %c0_19 = arith.constant 0 : index
    %c0_20 = arith.constant 0 : index
    %c0_21 = arith.constant 0 : index
    %c0_22 = arith.constant 0 : index
    %69 = vector.load %arg5[%c0_19, %c0_20, %c0_21, %c0_22] : memref<1x1x1x128xf32, #tpu.memory_space<vmem>>, vector<1x1x1x128xf32>
    %70 = vector.shape_cast %69 : vector<1x1x1x128xf32> to vector<1x128xf32>
    %71 = vector.shape_cast %68 : vector<1x128xf32> to vector<1x1x1x128xf32>
    tpu.vector_store %arg5[%c0_19, %c0_20, %c0_21, %c0_22], %71 {strides = array<i32>} : memref<1x1x1x128xf32, #tpu.memory_space<vmem>>, vector<1x1x1x128xf32>,
    return
  }
  func.func @transform_0(%arg0: i32, %arg1: i32) -> (i32, i32, i32, i32) {
    %c0_i32 = arith.constant 0 : i32
    %c0_i32_0 = arith.constant 0 : i32
    %c0_i32_1 = arith.constant 0 : i32
    return %arg0, %c0_i32, %arg1, %c0_i32_0 : i32, i32, i32, i32
  }
  func.func @transform_1(%arg0: i32, %arg1: i32) -> (i32, i32, i32) {
    %c0_i32 = arith.constant 0 : i32
    %c0_i32_0 = arith.constant 0 : i32
    return %arg0, %arg1, %c0_i32 : i32, i32, i32
  }
  func.func @transform_2(%arg0: i32, %arg1: i32) -> (i32, i32, i32) {
    %c0_i32 = arith.constant 0 : i32
    %c0_i32_0 = arith.constant 0 : i32
    return %arg0, %arg1, %c0_i32 : i32, i32, i32
  }
  func.func @transform_3(%arg0: i32, %arg1: i32) -> (i32, i32, i32, i32) {
    %c0_i32 = arith.constant 0 : i32
    %c0_i32_0 = arith.constant 0 : i32
    %c0_i32_1 = arith.constant 0 : i32
    return %arg0, %arg1, %c0_i32, %c0_i32_0 : i32, i32, i32, i32
  }
}

</mosaic_0001>

<bundles_post_ra>
// kernel: tpu_custom_call.1
= control target key start
LH: loop header
LB: loop body
LE: loop exit
PB: predicated region body
PF: predicated region fallthrough
CT: control target
= control target key end

     0   :  { %9 = vsyncpa [#allocation3], 0  ;;  %s394_s0 = inlined_call_operand.hbm [shape: f32[2,4,2,128], index: 0, kind: input, shape index: {}]   ;;  %s395_s1 = inlined_call_operand.hbm [shape: s32[2,2,128], index: 1, kind: input, shape index: {}]   ;;  %s396_s2 = inlined_call_operand.hbm [shape: f32[2,2,128], index: 2, kind: output, shape index: {0}]   ;;  %s397_s3 = inlined_call_operand.hbm [shape: f32[1,1,1,128], index: 3, kind: output, shape index: {1}]  }
   0x1   :  { %10 = vsyncpa [#allocation6], 0 }
   0x2   :  { %11 = vsyncpa [#allocation4], 0 }
   0x3   :  { %12 = vsyncpa [#allocation9], 0  ;;  %s17_s14 = sshll.u32 %s394_s0, 4  ;;  %s347_s15 = smov [#allocation2]   ;;  %s18_s14 = int_to_ptr.hbm [resolvable:$true] %s17_s14 }
   0x4   :  { %s19_s16 = sshll.u32 %s347_s15, 4  ;;  %s30_s19 = sshll.u32 %s395_s1, 4  ;;  %s20_s16 = int_to_ptr.vmem [resolvable:$true] %s19_s16  ;;  %s31_s19 = int_to_ptr.hbm [resolvable:$true] %s30_s19 }
   0x5   :  { %s348_s20 = smov 32   ;;  %s349_s21 = smov 2  }
   0x6   :  { %25 = dma.hbm_to_vmem [thread:$0]  %s18_s14, 256, %s20_s16, [#allocation3], %s348_s20, %s348_s20, %s349_s21  }
   0x7   :  { %s350_s22 = smov [#allocation5]  }
   0x8   :  { %s32_s23 = sshll.u32 %s350_s22, 4  ;;  %s33_s23 = int_to_ptr.vmem [resolvable:$true] %s32_s23 }
   0x9   :  { %38 = dma.hbm_to_vmem [thread:$0]  %s31_s19, 64, %s33_s23, [#allocation6], %s348_s20, %s348_s20, %s349_s21  }
   0xa   :  { %339 = dma.done.wait [#allocation3], 256  }
   0xb   :  { %340 = vsyncadd [#allocation3], 4294967040 }
   0xc   :  { %341 = dma.done.wait [#allocation6], 64  }
   0xd   :  { %342 = vsyncadd [#allocation6], 4294967232  ;;  %v47_v0 = vld [vmem:[#allocation2] sm:$0x3]  ;;  %v48_v1 = vld [vmem:[#allocation2 + $0x2] sm:$0x3] }
   0xe   :  { %v49_v2 = vld [vmem:[#allocation2 + $0x4] sm:$0x3]  ;;  %v57_v3 = vmax.f32 %v47_v0, %v48_v1  ;;  %v51_v4 = vld [vmem:[#allocation2 + $0x8] sm:$0x3]  ;;  %v50_v5 = vld [vmem:[#allocation2 + $0x6] sm:$0x3] }
   0xf   :  { %v52_v6 = vld [vmem:[#allocation2 + $0xa] sm:$0x3]  ;;  %v53_v8 = vld [vmem:[#allocation2 + $0xc] sm:$0x3]  ;;  %v54_v11 = vld [vmem:[#allocation2 + $0xe] sm:$0x3] }
  0x10   :  { %v59_v7 = vmax.f32 %v57_v3, %v49_v2  ;;  %v58_v9 = vmax.f32 %v51_v4, %v52_v6  ;;  %v55_v35 = vld [vmem:[#allocation5] sm:$0x3]  ;;  %v56_v42 = vld [vmem:[#allocation5 + $0x2] sm:$0x3]  ;;  %s351_s0 = smov [#allocation7]   ;;  %s183_s26 = sshll.u32 %s396_s2, 4  ;;  %s184_s26 = int_to_ptr.hbm [resolvable:$true] %s183_s26 }
  0x11   :  { %vm71_vm0 = vcmp.eq.s32.totalorder %v55_v35, 0  ;;  %vm85_vm1 = vcmp.eq.s32.totalorder %v55_v35, 1  ;;  %vm99_vm2 = vcmp.eq.s32.totalorder %v55_v35, 2  ;;  %vm72_vm3 = vcmp.eq.s32.totalorder %v56_v42, 0  ;;  %s181_s1 = sshll.u32 %s351_s0, 4  ;;  %s352_s27 = smov [#allocation8]   ;;  %s182_s1 = int_to_ptr.vmem [resolvable:$true] %s181_s1 }
  0x12   :  { %v61_v10 = vmax.f32 %v59_v7, %v50_v5  ;;  %v60_v12 = vmax.f32 %v58_v9, %v53_v8  ;;  %vm86_vm4 = vcmp.eq.s32.totalorder %v56_v42, 1  ;;  %vm113_vm5 = vcmp.eq.s32.totalorder %v55_v35, 3  ;;  %s195_s28 = sshll.u32 %s352_s27, 4  ;;  %s197_s4 = sshll.u32 %s397_s3, 4  ;;  %s196_s28 = int_to_ptr.vmem [resolvable:$true] %s195_s28  ;;  %s198_s4 = int_to_ptr.hbm [resolvable:$true] %s197_s4 }
  0x13   :  { %vm100_vm6 = vcmp.eq.s32.totalorder %v56_v42, 2  ;;  %vm114_vm10 = vcmp.eq.s32.totalorder %v56_v42, 3 }
  0x14   :  { %v63_v13 = vsub.f32 %v47_v0, %v61_v10  ;;  %v77_v14 = vsub.f32 %v48_v1, %v61_v10  ;;  %v91_v15 = vsub.f32 %v49_v2, %v61_v10  ;;  %v105_v16 = vsub.f32 %v50_v5, %v61_v10 }
  0x15   :  { %v62_v17 = vmax.f32 %v60_v12, %v54_v11 }
  0x16   :  { %v65_v18 = vmul.f32 1.442695, %v63_v13  ;;  %v79_v19 = vmul.f32 1.442695, %v77_v14  ;;  %v93_v20 = vmul.f32 1.442695, %v91_v15 }
  0x17   :  { %v107_v21 = vmul.f32 1.442695, %v105_v16  ;;  %v64_v22 = vsub.f32 %v51_v4, %v62_v17  ;;  %v78_v23 = vsub.f32 %v52_v6, %v62_v17  ;;  %v92_v24 = vsub.f32 %v53_v8, %v62_v17 }
  0x18   :  { %219 = vpow2.f32 %v65_v18  ;;  %v106_v25 = vsub.f32 %v54_v11, %v62_v17 }
  0x19   :  { %221 = vpow2.f32 %v79_v19  ;;  %v67_v26 = vmul.f32 1.442695, %v64_v22  ;;  %v81_v27 = vmul.f32 1.442695, %v78_v23  ;;  %v95_v28 = vmul.f32 1.442695, %v92_v24 }
  0x1a   :  { %223 = vpow2.f32 %v93_v20  ;;  %v109_v29 = vmul.f32 1.442695, %v106_v25 }
  0x1b   :  { %225 = vpow2.f32 %v107_v21 }
  0x1c   :  { %227 = vpow2.f32 %v67_v26 }
  0x1d   :  { %229 = vpow2.f32 %v81_v27 }
  0x1e   :  { %v220_v30 = vpop.eup %219  ;;  %231 = vpow2.f32 %v95_v28 }
  0x1f   :  { %v222_v31 = vpop.eup %221  ;;  %233 = vpow2.f32 %v109_v29  ;;  %v73_v44 = vsel %vm71_vm0, %v220_v30, 0.0  ;;  %vm165_vm0 = vcmask 1041408  }
  0x20   :  { %v224_v32 = vpop.eup %223  ;;  %v83_v33 = vadd.f32 %v222_v31, %v220_v30  ;;  %v87_v45 = vsel %vm85_vm1, %v222_v31, 0.0 }
  0x21   :  { %v226_v34 = vpop.eup %225  ;;  %v89_v48 = vadd.f32 %v87_v45, %v73_v44  ;;  %v101_v49 = vsel %vm99_vm2, %v224_v32, 0.0 }
  0x22   :  { %v228_v36 = vpop.eup %227  ;;  %v97_v37 = vadd.f32 %v224_v32, %v83_v33  ;;  %v115_v55 = vsel %vm113_vm5, %v226_v34, 0.0 }
  0x23   :  { %v230_v38 = vpop.eup %229  ;;  %v74_v50 = vsel %vm72_vm3, %v228_v36, 0.0  ;;  %v103_v54 = vadd.f32 %v101_v49, %v89_v48 }
  0x24   :  { %v232_v39 = vpop.eup %231  ;;  %v111_v40 = vadd.f32 %v226_v34, %v97_v37  ;;  %v84_v41 = vadd.f32 %v230_v38, %v228_v36  ;;  %v88_v51 = vsel %vm86_vm4, %v230_v38, 0.0 }
  0x25   :  { %v234_v43 = vpop.eup %233  ;;  %v90_v57 = vadd.f32 %v88_v51, %v74_v50  ;;  %v102_v60 = vsel %vm100_vm6, %v232_v39, 0.0  ;;  %v117_v63 = vadd.f32 %v115_v55, %v103_v54 }
  0x26   :  { %235 = vrcp.f32 %v111_v40  ;;  %v98_v46 = vadd.f32 %v232_v39, %v84_v41  ;;  %v130_v56 = vand.u32 2147483648, %v111_v40  ;;  %vm124_vm7 = vweird.f32 %v111_v40 }
  0x27   :  { %v128_v59 = vand.u32 2147483647, %v111_v40  ;;  %v104_v3 = vadd.f32 %v102_v60, %v90_v57  ;;  %v116_v8 = vsel %vm114_vm10, %v234_v43, 0.0 }
  0x28   :  { %v112_v47 = vadd.f32 %v234_v43, %v98_v46  ;;  %v131_v0 = vor.u32 1.1754944e-38, %v130_v56 }
  0x29   :  { %vm129_vm11 = vcmp.eq.f32.partialorder %v128_v59, 8.507059e+37  ;;  %v118_v13 = vadd.f32 %v116_v8, %v104_v3 }
  0x2a   :  { %237 = vrcp.f32 %v112_v47  ;;  %v145_v4 = vand.u32 2147483648, %v112_v47  ;;  %vm139_vm12 = vweird.f32 %v112_v47  ;;  %v143_v6 = vand.u32 2147483647, %v112_v47 }
  0x2c   :  { %v236_v52 = vpop.eup %235  ;;  %v146_v12 = vor.u32 1.1754944e-38, %v145_v4  ;;  %vm144_vm15 = vcmp.eq.f32.partialorder %v143_v6, 8.507059e+37 }
  0x2d   :  { %v120_v53 = vmul.f32 %v236_v52, %v111_v40  ;;  %vm125_vm8 = vweird.f32 %v236_v52 }
  0x2e   :  { %vm126_vm9 = vmor %vm124_vm7, %vm125_vm8 }
  0x2f   :  { %v121_v58 = vsub.f32 1.0, %v120_v53 }
  0x30   :  { %v238_v61 = vpop.eup %237 }
  0x31   :  { %v122_v62 = vmul.f32 %v236_v52, %v121_v58  ;;  %v135_v1 = vmul.f32 %v238_v61, %v112_v47  ;;  %vm140_vm13 = vweird.f32 %v238_v61 }
  0x32   :  { %vm141_vm14 = vmor %vm139_vm12, %vm140_vm13 }
  0x33   :  { %v123_v2 = vadd.f32 %v236_v52, %v122_v62  ;;  %v136_v5 = vsub.f32 1.0, %v135_v1 }
  0x35   :  { %v127_v7 = vsel %vm126_vm9, %v236_v52, %v123_v2  ;;  %v137_v10 = vmul.f32 %v238_v61, %v136_v5 }
  0x36   :  { %v132_v9 = vsel %vm129_vm11, %v131_v0, %v127_v7 }
  0x37   :  { %v133_v11 = vmul.f32 %v132_v9, %v117_v63  ;;  %v138_v14 = vadd.f32 %v238_v61, %v137_v10 }
  0x39   :  { %v149_v15 = vadd.f32 1e-07, %v133_v11  ;;  %v155_v16 = vsub.f32 1.0, %v133_v11  ;;  %v142_v17 = vsel %vm141_vm14, %v238_v61, %v138_v14  ;;  %v166_v21 = vsel %vm165_vm0, %v133_v11, 0.0 }
  0x3a   :  { %v147_v18 = vsel %vm144_vm15, %v146_v12, %v142_v17 }
  0x3b   :  { %239 = vlog2.f32 %v149_v15  ;;  %v157_v19 = vmul.f32 -1.0, %v155_v16  ;;  %v148_v20 = vmul.f32 %v147_v18, %v118_v13 }
  0x3d   :  { %v150_v22 = vadd.f32 1e-07, %v148_v20  ;;  %v156_v23 = vsub.f32 1.0, %v148_v20  ;;  %v167_v24 = vsel %vm165_vm0, %v148_v20, 0.0  ;;  %v159_v26 = vmul.f32 %v157_v19, %v155_v16 }
  0x3e   :  { %v168_v25 = vadd.f32 %v167_v24, %v166_v21 }
  0x3f   :  { %241 = vlog2.f32 %v150_v22  ;;  %v158_v28 = vmul.f32 -1.0, %v156_v23 }
  0x40   :  { %v169_v29 = vsel %vm165_vm0, %v168_v25, 0.0 }
  0x41   :  { %v240_v27 = vpop.eup %239  ;;  %v170_v31 = vrot.slane %v169_v29, 4  ;;  %v160_v34 = vmul.f32 %v158_v28, %v156_v23 }
  0x42   :  { %v152_v30 = vmul.f32 0.6931472, %v240_v27 }
  0x43   :  { %v171_v33 = vadd.f32 %v170_v31, %v169_v29 }
  0x44   :  { %v161_v32 = vmul.f32 %v159_v26, %v152_v30 }
  0x45   :  { %v242_v35 = vpop.eup %241  ;;  %v172_v36 = vrot.slane %v171_v33, 2 }
  0x46   :  { %163 = vst [vmem:[#allocation7] sm:$0x3] %v161_v32  ;;  %v154_v37 = vmul.f32 0.6931472, %v242_v35 }
  0x47   :  { %v173_v38 = vadd.f32 %v172_v36, %v171_v33 }
  0x48   :  { %v162_v39 = vmul.f32 %v160_v34, %v154_v37 }
  0x49   :  { %v174_v40 = vrot.slane %v173_v38, 1 }
  0x4a   :  { %164 = vst [vmem:[#allocation7 + $0x2] sm:$0x3] %v162_v39 }
  0x4b   :  { %v175_v41 = vadd.f32 %v174_v40, %v173_v38  ;;  %189 = dma.vmem_to_hbm [thread:$0]  %s182_s1, 64, %s184_s26, [#allocation4], %s348_s20, %s348_s20, %s349_s21  }
  0x4d   :  { %176 = vst [vmem:[#allocation8] sm:$0x1] %v175_v41 }
  0x4e   :  { %200 = dma.vmem_to_hbm [thread:$0]  %s196_s28, 16, %s198_s4, [#allocation9]  }
  0x4f   :  { %343 = dma.done.wait [#allocation4], 64  }
  0x50   :  { %344 = vsyncadd [#allocation4], 4294967232 }
  0x51   :  { %345 = dma.done.wait [#allocation9], 16  }
  0x52   :  { %346 = vsyncadd [#allocation9], 4294967280 }
  0x53   :  { %209 = vsyncpa [#allocation3], 1 }
  0x54   :  { %210 = vsyncpa [#allocation6], 1 }
  0x55   :  { %211 = vsyncpa [#allocation4], 1 }
  0x56   :  { %212 = vsyncpa [#allocation9], 1 }

</bundles_post_ra>
